<compile_context>
chip_gen: v7x
topology: tpu7x:2x2x1
jax: 0.10.0
libtpu: 0.0.40
codegen_flags: <defaults>
</compile_context>

<pallas_src>
import functools

import jax
import jax.numpy as jnp
from jax.experimental import pallas as pl
from jax.experimental.pallas import tpu as pltpu


def _round_up(x, m):
    return ((x + m - 1) // m) * m


def _choose_block_rows(M, D, *, target_bytes=4 << 20, vmem_budget=24 << 20):
    """Pick a row-tile size: multi-MiB output per step, VMEM-safe, >= 2 grid steps."""
    bytes_per_row = 4 * max(D, 1)
    # Aim for a few MiB of output per grid step so per-step overhead is amortized.
    br = max(512, target_bytes // bytes_per_row)
    # Keep double-buffered output (+ pos column) under the VMEM budget
    # (safe for v7x's 32 MiB scoped default / 64 MiB physical per TC).
    cap = vmem_budget // (2 * bytes_per_row + 8)
    br = min(br, max(cap, 8))
    # Keep at least 2 grid steps so the "parallel" row axis can shard across
    # v7x's two TensorCores; harmless on single-TC v5e/v6e.
    if M > 16:
        br = min(br, _round_up(pl.cdiv(M, 2), 8))
    br = max(8, (br // 8) * 8)
    if br >= M:
        return M  # single full-extent block (allowed even if M % 8 != 0)
    return br


def _pos_enc_kernel(pos_ref, inv_den_ref, phase_ref, o_ref, *, nrep):
    # pos_ref     : (rows, 1)   positions for this row tile
    # inv_den_ref : (1, dp)     reciprocal denominators (dp = d or d*repeat)
    # phase_ref   : (1, dp)     0 (even channel -> sin) or pi/2 (odd -> cos)
    # o_ref       : (rows, dp * nrep)
    angle = pos_ref[...] * inv_den_ref[...] + phase_ref[...]   # implicit broadcast
    tile = jnp.sin(angle).astype(o_ref.dtype)                  # one EUP op / element
    if nrep == 1:
        o_ref[...] = tile
    else:
        dp = tile.shape[-1]  # dp % 128 == 0 on this path -> lane-aligned stores
        for r in range(nrep):
            o_ref[:, r * dp:(r + 1) * dp] = tile


def positional_encoder_forward(batch_positions, inv_denom, phase, *, nrep=1,
                               out_dtype=jnp.float32, block_rows=None):
    """batch_positions: (B, S); inv_denom/phase: (dp,). Returns (B, S, dp*nrep)."""
    B, S = batch_positions.shape
    dp = inv_denom.shape[0]
    D = dp * nrep
    M = B * S

    pos = batch_positions.astype(jnp.float32).reshape(M, 1)
    inv_row = inv_denom.astype(jnp.float32).reshape(1, dp)
    phase_row = phase.astype(jnp.float32).reshape(1, dp)

    br = block_rows if block_rows is not None else _choose_block_rows(M, D)
    grid = (pl.cdiv(M, br),)  # ragged last block handled by Pallas masking

    kernel = functools.partial(_pos_enc_kernel, nrep=nrep)
    out = pl.pallas_call(
        kernel,
        out_shape=jax.ShapeDtypeStruct((M, D), out_dtype),
        grid=grid,
        in_specs=[
            pl.BlockSpec((br, 1), lambda i: (i, 0)),
            pl.BlockSpec((1, dp), lambda i: (0, 0)),
            pl.BlockSpec((1, dp), lambda i: (0, 0)),
        ],
        out_specs=pl.BlockSpec((br, D), lambda i: (i, 0)),
        compiler_params=pltpu.CompilerParams(
            dimension_semantics=("parallel",),
            vmem_limit_bytes=32 << 20,
        ),
    )(pos, inv_row, phase_row)

    return out.reshape(B, S, D)


class PositionalEncoderPallas:
    """Pallas equivalent of TSwinUnet PositionalEncoder(d, T, repeat, offset)."""

    def __init__(self, d, T=1000, repeat=None, offset=0, out_dtype=jnp.float32):
        self.d = d
        self.T = T
        self.offset = offset
        self.repeat = 1 if repeat is None else int(repeat)
        self.out_dtype = out_dtype

        idx = jnp.arange(offset, offset + d, dtype=jnp.float32)
        # torch.pow(T, 2 * (arange // 2) / d)  -> precompute the reciprocal.
        denom = jnp.power(float(T), 2.0 * jnp.floor(idx / 2.0) / float(d))
        inv_denom = (1.0 / denom).astype(jnp.float32)
        # cos(x) = sin(x + pi/2); parity is the local output-channel index.
        ch = jnp.arange(d)
        phase = jnp.where((ch % 2) == 1, 0.5 * jnp.pi, 0.0).astype(jnp.float32)

        if self.repeat > 1 and d % 128 == 0:
            # Lane-aligned channel slices -> replicate inside the kernel
            # (computes the sinusoid once, stores it `repeat` times).
            self.nrep = self.repeat
            self.inv_denom = inv_denom
            self.phase = phase
        else:
            # Fold repeat into the parameter rows on the host; single fused pass.
            self.nrep = 1
            self.inv_denom = jnp.tile(inv_denom, (self.repeat,))
            self.phase = jnp.tile(phase, (self.repeat,))

    def __call__(self, batch_positions):
        return positional_encoder_forward(
            batch_positions, self.inv_denom, self.phase,
            nrep=self.nrep, out_dtype=self.out_dtype)


def reference_forward(batch_positions, d, T=1000, repeat=None, offset=0):
    """Pure-JAX reference mirroring the PyTorch forward semantics."""
    idx = jnp.arange(offset, offset + d, dtype=jnp.float32)
    denom = jnp.power(float(T), 2.0 * jnp.floor(idx / 2.0) / float(d))
    table = batch_positions.astype(jnp.float32)[:, :, None] / denom[None, None, :]
    ch = jnp.arange(d)
    table = jnp.where((ch % 2 == 0)[None, None, :], jnp.sin(table), jnp.cos(table))
    if repeat is not None:
        table = jnp.concatenate([table] * repeat, axis=-1)
    return table


if __name__ == "__main__":
    key = jax.random.PRNGKey(0)
    B, S, d = 2, 16, 32
    # Day-of-year-style positions (typical use of this module).
    positions = jax.random.randint(key, (B, S), 0, 365).astype(jnp.float32)

    # repeat=None path
    enc = PositionalEncoderPallas(d, T=1000, repeat=None, offset=0)
    out = jax.block_until_ready(enc(positions))
    assert out.shape == (B, S, d), out.shape
    ref = reference_forward(positions, d, T=1000, repeat=None, offset=0)
    err = float(jnp.max(jnp.abs(out - ref)))
    if err > 1e-2:
        raise AssertionError(f"Pallas output mismatch vs reference (repeat=None): {err}")

    # repeat path (host-tiled params: d % 128 != 0)
    rep = 3
    enc2 = PositionalEncoderPallas(d, T=1000, repeat=rep, offset=0)
    out2 = jax.block_until_ready(enc2(positions))
    assert out2.shape == (B, S, d * rep), out2.shape
    ref2 = reference_forward(positions, d, T=1000, repeat=rep, offset=0)
    err2 = float(jnp.max(jnp.abs(out2 - ref2)))
    if err2 > 1e-2:
        raise AssertionError(f"Pallas output mismatch vs reference (repeat={rep}): {err2}")

    # repeat path with in-kernel replication (d % 128 == 0)
    d3, rep3 = 128, 2
    enc3 = PositionalEncoderPallas(d3, T=1000, repeat=rep3, offset=0)
    out3 = jax.block_until_ready(enc3(positions))
    assert out3.shape == (B, S, d3 * rep3), out3.shape
    ref3 = reference_forward(positions, d3, T=1000, repeat=rep3, offset=0)
    err3 = float(jnp.max(jnp.abs(out3 - ref3)))
    if err3 > 1e-2:
        raise AssertionError(f"Pallas output mismatch vs reference (d=128, repeat={rep3}): {err3}")

    print("KERNEL_OK")
</pallas_src>

<mosaic_0001>
module attributes {stable_mosaic.version = 11 : i64} {
  func.func @_pos_enc_kernel(%arg0: i32, %arg1: memref<16x1xf32, #tpu.memory_space<vmem>>, %arg2: memref<1x32xf32, #tpu.memory_space<vmem>>, %arg3: memref<1x32xf32, #tpu.memory_space<vmem>>, %arg4: memref<16x32xf32, #tpu.memory_space<vmem>>) attributes {dimension_semantics = [#tpu.dimension_semantics<parallel>], iteration_bounds = array<i64: 2>, scalar_prefetch = 0 : i64, scratch_operands = 0 : i64, tpu.core_type = #tpu.core_type<tc>, window_params = [{transform_indices = @transform_0, window_bounds = array<i64: 16, 1>}, {pipeline_mode = #tpu.pipeline_mode<synchronous>, transform_indices = @transform_1, window_bounds = array<i64: 1, 32>}, {pipeline_mode = #tpu.pipeline_mode<synchronous>, transform_indices = @transform_2, window_bounds = array<i64: 1, 32>}, {transform_indices = @transform_3, window_bounds = array<i64: 16, 32>}]} {
    %c0 = arith.constant 0 : index
    %c0_0 = arith.constant 0 : index
    %0 = vector.load %arg1[%c0, %c0_0] : memref<16x1xf32, #tpu.memory_space<vmem>>, vector<16x1xf32>
    %c0_1 = arith.constant 0 : index
    %c0_2 = arith.constant 0 : index
    %1 = vector.load %arg2[%c0_1, %c0_2] : memref<1x32xf32, #tpu.memory_space<vmem>>, vector<1x32xf32>
    %2 = vector.broadcast %0 : vector<16x1xf32> to vector<16x32xf32>
    %3 = vector.broadcast %1 : vector<1x32xf32> to vector<16x32xf32>
    %4 = arith.mulf %2, %3 : vector<16x32xf32>
    %c0_3 = arith.constant 0 : index
    %c0_4 = arith.constant 0 : index
    %5 = vector.load %arg3[%c0_3, %c0_4] : memref<1x32xf32, #tpu.memory_space<vmem>>, vector<1x32xf32>
    %6 = vector.broadcast %5 : vector<1x32xf32> to vector<16x32xf32>
    %7 = arith.addf %4, %6 : vector<16x32xf32>
    %8 = math.sin %7 : vector<16x32xf32>
    %c0_5 = arith.constant 0 : index
    %c0_6 = arith.constant 0 : index
    %9 = vector.load %arg4[%c0_5, %c0_6] : memref<16x32xf32, #tpu.memory_space<vmem>>, vector<16x32xf32>
    tpu.vector_store %arg4[%c0_5, %c0_6], %8 {strides = array<i32>} : memref<16x32xf32, #tpu.memory_space<vmem>>, vector<16x32xf32>,
    return
  }
  func.func @transform_0(%arg0: i32) -> (i32, i32) {
    %c0_i32 = arith.constant 0 : i32
    %c0_i32_0 = arith.constant 0 : i32
    return %arg0, %c0_i32 : i32, i32
  }
  func.func @transform_1(%arg0: i32) -> (i32, i32) {
    %c0_i32 = arith.constant 0 : i32
    %c0_i32_0 = arith.constant 0 : i32
    %c0_i32_1 = arith.constant 0 : i32
    return %c0_i32, %c0_i32_0 : i32, i32
  }
  func.func @transform_2(%arg0: i32) -> (i32, i32) {
    %c0_i32 = arith.constant 0 : i32
    %c0_i32_0 = arith.constant 0 : i32
    %c0_i32_1 = arith.constant 0 : i32
    return %c0_i32, %c0_i32_0 : i32, i32
  }
  func.func @transform_3(%arg0: i32) -> (i32, i32) {
    %c0_i32 = arith.constant 0 : i32
    %c0_i32_0 = arith.constant 0 : i32
    return %arg0, %c0_i32 : i32, i32
  }
}

</mosaic_0001>

<bundles_post_ra>
// kernel: tpu_custom_call.1
= control target key start
LH: loop header
LB: loop body
LE: loop exit
PB: predicated region body
PF: predicated region fallthrough
CT: control target
= control target key end

     0   :  { %8 = vsyncpa [#allocation3], 0  ;;  %s853_s0 = inlined_call_operand.vmem [shape: f32[32,1], index: 0, kind: input, shape index: {}]   ;;  %s854_s1 = inlined_call_operand.vmem [shape: f32[1,32], index: 1, kind: input, shape index: {}]   ;;  %s855_s2 = inlined_call_operand.vmem [shape: f32[1,32], index: 2, kind: input, shape index: {}]   ;;  %s856_s3 = inlined_call_operand.hbm [shape: f32[32,32], index: 3, kind: output, shape index: {}]  }
   0x1   :  { %10 = vsyncpa [#allocation3 + $0x1], 0  ;;  %s671_s12 = smov 0   ;;  %s673_s13 = smov 0  }
   0x2   :  { %s675_s14 = smov 0   ;;  %s677_s15 = smov 0  }
   0x3 LB: > { %s692_s16 = sadd.s32 4294967295, %s639_s15   ;;  %s489_s17 = sadd.s32 4294967294, %s639_s15   ;;  %s639_s15 = sphi %s677_s15, %s864_s15   ;;  %s635_s14 = sphi %s675_s14, %s863_s14   ;;  %s631_s13 = sphi %s673_s13, %s862_s13   ;;  %s627_s12 = sphi %s671_s12, %s861_s12  }
   0x4   : > { %s696_s18 = sadd.s32 1, %s639_s15   ;;  %s91_s19 = sadd.s32 1, %s635_s14 }
   0x5   : > { %s88_s20 = ssub.s32 %s639_s15, %s696_s18  ;;  %p101_p0 = scmp.ne.s32.totalorder %s635_s14, %s631_s13 }
   0x6   : > { %p89_p1 = scmp.eq.s32.totalorder %s88_s20, 0  ;;  %p102_p2 = scmp.eq.s32.totalorder %s692_s16, 1 }
   0x7   : > { %p107_p3 = scmp.ne.s32.totalorder %s631_s13, %s627_s12  ;;  %p108_p4 = scmp.eq.s32.totalorder %s489_s17, 1 }
   0x8   : > { %s707_s21 = scalar_select %p89_p1, %s635_s14, %s91_s19  }
   0x9   : > { %p709_p5 = por %p102_p2, %p101_p0  ;;  %p713_p6 = por %p108_p4, %p107_p3 }
   0xa   : > { %p492_p7 = scmp.ge.s32.totalorder %s639_s15, 1  ;;  %p141_p8 = scmp.lt.s32.totalorder %s639_s15, 3 }
   0xc   : > { %p142_p9 = pnand %p492_p7, %p141_p8 }
   0xd   : > { %s494_s24 = sshll.u32 (!%p142_p9), %s692_s16, 1  ;;  %v641_v0 = vmov (!%p142_p9), 0   ;;  %v496_v3 = vld [vmem:[%s854_s1] ss:$0 sm:$0xff] (!%p142_p9)  ;;  %v642_v27 = vmov (!%p142_p9), 683565275  }
   0xe   : > { %145 = sbr.rel (%p142_p9) target bundleno = 262 (0x106), region = 32  ;;  %568 = vset.pattern.permute.xlu0 (!%p142_p9), %v641_v0  ;;  %p166_p10 = scmp.lt.s32.totalorder (!%p142_p9), %s494_s24, 3  ;;  %v497_v4 = vld [vmem:[%s855_s2] ss:$0 sm:$0xff] (!%p142_p9)  ;;  %v643_v31 = vmov (!%p142_p9), 2475754826  }
   0xf   : > { %v644_v33 = vmov (!%p142_p9), 2131351028   ;;  %v645_v35 = vmov (!%p142_p9), 2102212464   ;;  %v646_v37 = vmov (!%p142_p9), 920167782  }
  0x10   : > { %v647_v44 = vmov (!%p142_p9), 1326507024   ;;  %s162_s6 = sand.u32 (!%p142_p9), 1, %s631_s13   ;;  %s511_s9 = sshll.u32 (!%p142_p9), %s692_s16, 8 }
  0x11   : > { %s493_s7 = sshll.u32 (!%p142_p9), %s162_s6, 4  ;;  %s804_s19 = scalar_lea.hbm (!%p142_p9), %s856_s3, %s511_s9 }
  0x12   : > { %s164_s8 = scalar_lea.vmem (!%p142_p9), [#allocation2], %s493_s7  ;;  %s812_s16 = scalar_lea.sflag (!%p142_p9), [#allocation3], %s162_s6 }
  0x13   : > { %s427_s10 = sshll.u32 (!%p142_p9), %s164_s8, 4  ;;  %s806_s10 = int_to_ptr.vmem [resolvable:$true] %s427_s10 }
  0x14   : > { %s577_s20 = scalar_lea.vmem (!%p142_p9), %s806_s10, 256 }
  0x15   : > { %s866_s24 = smov (!%p166_p10, %s494_s24), 3  ;;  %p578_p11 = scmp.ne.s32.totalorder %s806_s10, %s577_s20 }
  0x16   : > { %s495_s25 = sshll.u32 %s866_s24, 3  ;;  %s648_s24 = smov [#allocation2]  }
  0x17   : > { %s169_s28 = scalar_lea.vmem %s853_s0, %s495_s25  ;;  %p579_p12 = pnand %p578_p11, %p709_p5 }
  0x18   : > { %v172_v1 = vld [vmem:[%s169_s28] sm:$0xff]  ;;  %v173_v2 = vld [vmem:[%s169_s28 + $0x8] sm:$0xff]  ;;  %s581_s25 = sshll.u32 %s648_s24, 4  ;;  %s582_s25 = int_to_ptr.vmem [resolvable:$false] %s581_s25 }
  0x19   : > { %177 = vperm.xlu0 %568, %v172_v1   ;;  %p580_p13 = pneg %p579_p12  ;;  %s583_s26 = scalar_lea.vmem %s582_s25, 512 }
  0x1a   : > { %p584_p0 = scmp.lt.s32.totalorder %s806_s10, %s582_s25  ;;  %p585_p1 = scmp.lt.s32.totalorder %s583_s26, %s577_s20 }
  0x1c   : > { %p586_p2 = por %p585_p1, %p584_p0 }
  0x1d   : > { %182 = vperm.xlu0 %568, %v173_v2  }
  0x1e   : > { %p587_p3 = pnand %p586_p2, %p580_p13 }
  0x98   : > { %v178_v5 = vpop.permute.xlu0 %177 }
  0x99   : > { %v191_v6 = vmul.f32 %v496_v3, %v178_v5 }
  0x9b   : > { %v729_v7 = vadd.f32 %v497_v4, %v191_v6 }
  0x9c   : > { %v183_v8 = vpop.permute.xlu0 %182 }
  0x9d   : > { %v202_v9 = vand.u32 2147483647, %v729_v7  ;;  %v205_v10 = vand.u32 2139095040, %v729_v7  ;;  %v192_v11 = vmul.f32 %v496_v3, %v183_v8  ;;  %vm204_vm14 = vcmp.lt.s32.totalorder %v729_v7, 0 }
  0x9f   : > { %v206_v12 = vshrl.u32 %v205_v10, 23  ;;  %v733_v13 = vadd.f32 %v497_v4, %v192_v11  ;;  %v209_v14 = vand.u32 8388607, %v202_v9  ;;  %vm203_vm15 = vcmp.le.f32.partialorder %v202_v9, 0.7853982 }
  0xa1   : > { %v498_v15 = vadd.s32 4294967169, %v206_v12  ;;  %v309_v16 = vand.u32 2139095040, %v733_v13  ;;  %v210_v18 = vor.u32 8388608, %v209_v14  ;;  %v306_v20 = vand.u32 2147483647, %v733_v13 }
  0xa3   : > { %v212_v17 = vadd.s32 1, %v498_v15  ;;  %v310_v19 = vshrl.u32 %v309_v16, 23  ;;  %v739_v25 = vshll.u32 %v210_v18, 8  ;;  %v313_v29 = vand.u32 8388607, %v306_v20 }
  0xa5   : > { %vm213_vm0 = vcmp.gt.s32.totalorder %v212_v17, 0  ;;  %v502_v22 = vadd.s32 4294967169, %v310_v19  ;;  %v314_v59 = vor.u32 8388608, %v313_v29 }
  0xa6   : > { %v214_v21 = vsel %vm213_vm0, %v212_v17, 0  ;;  %vm308_vm0 = vcmp.lt.s32.totalorder %v733_v13, 0 }
  0xa7   : > { %v215_v23 = vshrl.u32 %v214_v21, 5  ;;  %v216_v24 = vand.u32 31, %v214_v21  ;;  %v316_v30 = vadd.s32 1, %v502_v22  ;;  %v354_v10 = vshll.u32 %v314_v59, 8 }
  0xa9   : > { %v217_v26 = vsub.s32 32, %v216_v24  ;;  %v219_v28 = vshll.u32 %v642_v27, %v216_v24  ;;  %v222_v32 = vshll.u32 %v643_v31, %v216_v24  ;;  %v225_v34 = vshll.u32 %v644_v33, %v216_v24 }
  0xaa   : > { %v228_v36 = vshll.u32 %v645_v35, %v216_v24  ;;  %v231_v38 = vshll.u32 %v646_v37, %v216_v24  ;;  %vm234_vm1 = vcmp.lt.s32.totalorder %v215_v23, 1  ;;  %vm236_vm2 = vcmp.lt.s32.totalorder %v215_v23, 3 }
  0xab   : > { %v220_v39 = vshrl.u32 %v643_v31, %v217_v26  ;;  %v223_v40 = vshrl.u32 %v644_v33, %v217_v26  ;;  %v226_v41 = vshrl.u32 %v645_v35, %v217_v26  ;;  %v218_v42 = vshrl.u32 %v642_v27, %v217_v26 }
  0xac   : > { %v229_v43 = vshrl.u32 %v646_v37, %v217_v26  ;;  %v232_v45 = vshrl.u32 %v647_v44, %v217_v26  ;;  %vm317_vm3 = vcmp.gt.s32.totalorder %v316_v30, 0  ;;  %vm237_vm4 = vcmp.lt.s32.totalorder %v215_v23, 4 }
  0xad   : > { %v221_v46 = vor.u32 %v220_v39, %v219_v28  ;;  %v224_v47 = vor.u32 %v223_v40, %v222_v32  ;;  %v227_v48 = vor.u32 %v226_v41, %v225_v34  ;;  %v318_v51 = vsel %vm317_vm3, %v316_v30, 0 }
  0xae   : > { %v230_v49 = vor.u32 %v229_v43, %v228_v36  ;;  %v233_v50 = vor.u32 %v232_v45, %v231_v38  ;;  %vm235_vm5 = vcmp.lt.s32.totalorder %v215_v23, 2  ;;  %v320_v62 = vand.u32 31, %v318_v51 }
  0xaf   : > { %v238_v52 = vsel %vm234_vm1, %v218_v42, %v221_v46  ;;  %v239_v53 = vsel %vm237_vm4, %v227_v48, 2102212464  ;;  %v242_v54 = vsel %vm234_vm1, %v221_v46, %v224_v47  ;;  %v246_v55 = vsel %vm234_vm1, %v224_v47, %v227_v48 }
  0xb0   : > { %v240_v56 = vsel %vm236_vm2, %v224_v47, %v239_v53  ;;  %v243_v57 = vsel %vm237_vm4, %v230_v49, 920167782  ;;  %v247_v58 = vsel %vm237_vm4, %v233_v50, 1326507024  ;;  %v319_v6 = vshrl.u32 %v318_v51, 5 }
  0xb1   : > { %v244_v60 = vsel %vm236_vm2, %v227_v48, %v243_v57  ;;  %v248_v61 = vsel %vm236_vm2, %v230_v49, %v247_v58  ;;  %v241_v63 = vsel %vm235_vm5, %v238_v52, %v240_v56  ;;  %v321_v8 = vsub.s32 32, %v320_v62 }
  0xb2   : > { %v245_v0 = vsel %vm235_vm5, %v242_v54, %v244_v60  ;;  %v249_v1 = vsel %vm235_vm5, %v246_v55, %v248_v61  ;;  %v257_v11 = vmul.u32 %v739_v25, %v241_v63  ;;  %v323_v12 = vshll.u32 %v642_v27, %v320_v62 }
  0xb3   : > { %v752_v2 = vmul.u32.u64.low %v739_v25, %v249_v1  ;;  %v753_v3 = vmul.u32.u64.high %v739_v25, %v249_v1, %v752_v2  ;;  %v756_v4 = vmul.u32.u64.low %v739_v25, %v245_v0  ;;  %v757_v5 = vmul.u32.u64.high %v739_v25, %v245_v0, %v756_v4 }
  0xb4   : > { %v326_v14 = vshll.u32 %v643_v31, %v320_v62  ;;  %v329_v15 = vshll.u32 %v644_v33, %v320_v62  ;;  %v324_v16 = vshrl.u32 %v643_v31, %v321_v8  ;;  %v327_v17 = vshrl.u32 %v644_v33, %v321_v8 }
  0xb5   : > { %v330_v18 = vshrl.u32 %v645_v35, %v321_v8  ;;  %v332_v19 = vshll.u32 %v645_v35, %v320_v62  ;;  %vm259_vm6 = vc.u32 %v753_v3, %v756_v4  ;;  %v260_v21 = vadd.s32 1, %v757_v5 }
  0xb6   : > { %v333_v22 = vshrl.u32 %v646_v37, %v321_v8  ;;  %v335_v23 = vshll.u32 %v646_v37, %v320_v62  ;;  %v325_v24 = vor.u32 %v324_v16, %v323_v12  ;;  %v328_v26 = vor.u32 %v327_v17, %v326_v14 }
  0xb7   : > { %v331_v28 = vor.u32 %v330_v18, %v329_v15  ;;  %v336_v29 = vshrl.u32 %v647_v44, %v321_v8  ;;  %v261_v25 = vsel %vm259_vm6, %v260_v21, %v757_v5  ;;  %vm338_vm7 = vcmp.lt.s32.totalorder %v319_v6, 1 }
  0xb8   : > { %v334_v30 = vor.u32 %v333_v22, %v332_v19  ;;  %vm341_vm8 = vcmp.lt.s32.totalorder %v319_v6, 4  ;;  %v262_v31 = vadd.s32 %v261_v25, %v257_v11  ;;  %vm340_vm9 = vcmp.lt.s32.totalorder %v319_v6, 3 }
  0xb9   : > { %v337_v32 = vor.u32 %v336_v29, %v335_v23  ;;  %v343_v33 = vsel %vm341_vm8, %v331_v28, 2102212464  ;;  %v322_v34 = vshrl.u32 %v642_v27, %v321_v8  ;;  %v346_v35 = vsel %vm338_vm7, %v325_v24, %v328_v26 }
  0xba   : > { %v347_v36 = vsel %vm341_vm8, %v334_v30, 920167782  ;;  %v350_v38 = vsel %vm338_vm7, %v328_v26, %v331_v28  ;;  %v263_v39 = vadd.s32 536870912, %v262_v31  ;;  %vm339_vm10 = vcmp.lt.s32.totalorder %v319_v6, 2 }
  0xbb   : > { %v348_v37 = vsel %vm340_vm9, %v331_v28, %v347_v36  ;;  %v351_v40 = vsel %vm341_vm8, %v337_v32, 1326507024  ;;  %v342_v41 = vsel %vm338_vm7, %v322_v34, %v325_v24  ;;  %v344_v42 = vsel %vm340_vm9, %v328_v26, %v343_v33 }
  0xbc   : > { %v349_v43 = vsel %vm339_vm10, %v346_v35, %v348_v37  ;;  %v352_v44 = vsel %vm340_vm9, %v334_v30, %v351_v40  ;;  %v264_v45 = vshrl.u32 %v263_v39, 30  ;;  %v345_v51 = vsel %vm339_vm10, %v342_v41, %v344_v42 }
  0xbd   : > { %v353_v46 = vsel %vm339_vm10, %v350_v38, %v352_v44  ;;  %v767_v47 = vmul.u32.u64.low %v354_v10, %v349_v43  ;;  %v768_v48 = vmul.u32.u64.high %v354_v10, %v349_v43, %v767_v47  ;;  %v361_v54 = vmul.u32 %v354_v10, %v345_v51 }
  0xbe   : > { %v770_v49 = vmul.u32.u64.low %v354_v10, %v353_v46  ;;  %v771_v50 = vmul.u32.u64.high %v354_v10, %v353_v46, %v770_v49  ;;  %v265_v27 = vshll.u32 %v264_v45, 30  ;;  %v258_v2 = vadd.s32 %v756_v4, %v753_v3 }
  0xbf   : > { %v364_v53 = vadd.s32 1, %v768_v48  ;;  %v288_v24 = vsub.s32 4, %v264_v45  ;;  %vm787_vm1 = vcmp.le.f32.partialorder %v306_v20, 0.7853982  ;;  %vm410_vm5 = vcmask 261120  }
  0xc0   : > { %v266_v52 = vsub.s32 %v262_v31, %v265_v27  ;;  %vm363_vm11 = vc.u32 %v771_v50, %v767_v47  ;;  %v362_v3 = vadd.s32 %v767_v47, %v771_v50  ;;  %vm294_vm6 = vweird.f32 %v729_v7 }
  0xc1   : > { %v365_v56 = vsel %vm363_vm11, %v364_v53, %v768_v48  ;;  %v289_v33 = vsel %vm204_vm14, %v288_v24, %v264_v45  ;;  %vm398_vm10 = vweird.f32 %v733_v13 }
  0xc2   : > { %v268_v55 = vsub.s32 0, %v266_v52  ;;  %v366_v57 = vadd.s32 %v365_v56, %v361_v54  ;;  %v291_v38 = vsel %vm203_vm15, 0, %v289_v33 }
  0xc3   : > { %v295_v41 = vadd.s32 3, %v291_v38 }
  0xc4   : > { %v499_v58 = vmin.u32 %v268_v55, %v266_v52  ;;  %v367_v59 = vadd.s32 536870912, %v366_v57 }
  0xc5   : > { %v296_v46 = vand.u32 3, %v295_v41 }
  0xc6   : > { %v270_v60 = vclz %v499_v58  ;;  %v368_v61 = vshrl.u32 %v367_v59, 30 }
  0xc7   : > { %vm301_vm2 = vcmp.eq.s32.totalorder %v296_v46, 2  ;;  %vm298_vm3 = vcmp.eq.s32.totalorder %v296_v46, 0  ;;  %vm297_vm4 = vcmp.lt.s32.totalorder %v296_v46, 2 }
  0xc8   : > { %v500_v62 = vadd.s32 4294967294, %v270_v60  ;;  %v369_v63 = vshll.u32 %v368_v61, 30  ;;  %v392_v43 = vsub.s32 4, %v368_v61 }
  0xca   : > { %vm501_vm12 = vcmp.lt.s32.totalorder %v500_v62, 0  ;;  %v370_v1 = vsub.s32 %v366_v57, %v369_v63  ;;  %v393_v47 = vsel %vm308_vm0, %v392_v43, %v368_v61 }
  0xcb   : > { %v273_v0 = vsel %vm501_vm12, 0, %v500_v62  ;;  %v395_v51 = vsel %vm787_vm1, 0, %v393_v47 }
  0xcc   : > { %v274_v5 = vsub.s32 32, %v273_v0  ;;  %v278_v6 = vsub.s32 4294967266, %v273_v0  ;;  %v372_v8 = vsub.s32 0, %v370_v1  ;;  %v275_v10 = vshll.u32 %v266_v52, %v273_v0 }
  0xcd   : > { %v399_v54 = vadd.s32 3, %v395_v51 }
  0xce   : > { %v276_v11 = vshrl.u32 %v258_v2, %v274_v5  ;;  %v279_v12 = vadd.s32 127, %v278_v6  ;;  %v503_v14 = vmin.u32 %v372_v8, %v370_v1 }
  0xcf   : > { %v400_v57 = vand.u32 3, %v399_v54 }
  0xd0   : > { %v277_v15 = vor.u32 %v276_v11, %v275_v10  ;;  %v280_v16 = vshll.u32 %v279_v12, 23  ;;  %v374_v17 = vclz %v503_v14 }
  0xd1   : > { %vm405_vm7 = vcmp.eq.s32.totalorder %v400_v57, 2  ;;  %vm402_vm8 = vcmp.eq.s32.totalorder %v400_v57, 0  ;;  %vm401_vm9 = vcmp.lt.s32.totalorder %v400_v57, 2 }
  0xd2   : > { %v281_v18 = vor.u32 4788187, %v280_v16  ;;  %v504_v19 = vadd.s32 4294967294, %v374_v17  ;;  %v284_v22 = vcvt.s32.f32 %v277_v15 }
  0xd4   : > { %v282_v21 = vand.u32 2147483647, %v281_v18  ;;  %vm505_vm13 = vcmp.lt.s32.totalorder %v504_v19, 0 }
  0xd5   : > { %v377_v26 = vsel %vm505_vm13, 0, %v504_v19 }
  0xd6   : > { %v285_v23 = vmul.f32 %v284_v22, %v282_v21  ;;  %v378_v4 = vsub.s32 32, %v377_v26  ;;  %v382_v28 = vsub.s32 4294967266, %v377_v26  ;;  %v379_v25 = vshll.u32 %v370_v1, %v377_v26 }
  0xd8   : > { %v286_v29 = vxor.u32 2147483648, %v285_v23  ;;  %v380_v30 = vshrl.u32 %v362_v3, %v378_v4  ;;  %v383_v31 = vadd.s32 127, %v382_v28 }
  0xda   : > { %v287_v32 = vsel %vm204_vm14, %v286_v29, %v285_v23  ;;  %v381_v35 = vor.u32 %v380_v30, %v379_v25  ;;  %v384_v36 = vshll.u32 %v383_v31, 23 }
  0xdb   : > { %v290_v34 = vsel %vm203_vm15, %v729_v7, %v287_v32 }
  0xdc   : > { %569 = vcosq.f32 %v290_v34  ;;  %v385_v39 = vor.u32 4788187, %v384_v36  ;;  %v388_v40 = vcvt.s32.f32 %v381_v35 }
  0xdd   : > { %571 = vsinq.f32 %v290_v34 }
  0xde   : > { %v386_v37 = vand.u32 2147483647, %v385_v39 }
  0xe0   : > { %v389_v42 = vmul.f32 %v388_v40, %v386_v37 }
  0xe2   : > { %v390_v44 = vxor.u32 2147483648, %v389_v42 }
  0xe4   : > { %v391_v45 = vsel %vm308_vm0, %v390_v44, %v389_v42 }
  0xe5   : > { %v394_v49 = vsel %vm787_vm1, %v733_v13, %v391_v45 }
  0xe6   : > { %v570_v48 = vpop.eup %569  ;;  %573 = vcosq.f32 %v394_v49 }
  0xe7   : > { %v572_v50 = vpop.eup %571  ;;  %v302_v27 = vxor.u32 2147483648, %v570_v48  ;;  %575 = vsinq.f32 %v394_v49 }
  0xe8   : > { %v299_v20 = vxor.u32 2147483648, %v572_v50 }
  0xe9   : > { %v303_v52 = vsel %vm301_vm2, %v302_v27, %v572_v50 }
  0xea   : > { %v300_v53 = vsel %vm298_vm3, %v570_v48, %v299_v20 }
  0xeb   : > { %v304_v55 = vsel %vm297_vm4, %v300_v53, %v303_v52 }
  0xec   : > { %v305_v56 = vsel %vm294_vm6, nan, %v304_v55 }
  0xed   : > { %411 = vst.msk [vmem:[%s164_s8] sm:$0xff] %vm410_vm5, %v305_v56 }
  0xf0   : > { %v574_v58 = vpop.eup %573 }
  0xf1   : > { %v576_v59 = vpop.eup %575  ;;  %v406_v60 = vxor.u32 2147483648, %v574_v58 }
  0xf2   : > { %v403_v61 = vxor.u32 2147483648, %v576_v59 }
  0xf3   : > { %v407_v62 = vsel %vm405_vm7, %v406_v60, %v576_v59 }
  0xf4   : > { %v404_v63 = vsel %vm402_vm8, %v574_v58, %v403_v61 }
  0xf5   : > { %v408_v7 = vsel %vm401_vm9, %v404_v63, %v407_v62 }
  0xf6   : > { %v409_v0 = vsel %vm398_vm10, nan, %v408_v7 }
  0xf7   : > { %412 = vst.msk [vmem:[%s164_s8 + $0x8] sm:$0xff] %vm410_vm5, %v409_v0 }
  0xf8   : > { %590 = shalt.err (!%p587_p3)
}
  0xf9   : > { %s591_s27 = scalar_lea.hbm %s804_s19, 256  ;;  %s595_s30 = scalar_lea.hbm %s856_s3, 512 }
  0xfa   : > { %p592_p4 = scmp.ne.s32.totalorder %s804_s19, %s591_s27  ;;  %p596_p9 = scmp.lt.u32.totalorder %s804_s19, %s856_s3 }
  0xfb   : > { %p597_p10 = scmp.lt.u32.totalorder %s595_s30, %s591_s27  ;;  %p599_p12 = scmp.lt.u32.totalorder %s591_s27, %s804_s19 }
  0xfc   : > { %p593_p7 = pnand %p592_p4, %p709_p5 }
  0xfd   : > { %p598_p11 = por %p597_p10, %p596_p9 }
  0xfe   : > { %p594_p8 = pneg %p593_p7 }
  0xff   : > { %p600_p13 = por %p599_p12, %p598_p11 }
 0x101   : > { %p601_p0 = pnand %p600_p13, %p594_p8 }
 0x103   : > { %604 = shalt.err (!%p601_p0)
}
 0x104   : > { %s649_s6 = smov 128   ;;  %s650_s7 = smov 8  }
 0x105   : > { %520 = dma.vmem_to_hbm [thread:$0]  (%p709_p5), %s806_s10, 256, %s804_s19, %s812_s16, %s649_s6, %s649_s6, %s650_s7  }
 0x106 PF: > { %p526_p1 = scmp.ge.s32.totalorder %s639_s15, 2  ;;  %s442_s8 = sand.u32 1, %s627_s12  }
 0x107   : > { %s443_s9 = scalar_lea.sflag [#allocation3], %s442_s8 }
 0x108   : > { %p523_p2 = pnand %p526_p1, %p713_p6 }
 0x10a   : > { %622 = dma.done.wait (!%p523_p2), %s443_s9, 256  }
 0x10b   : > { %624 = vsyncadd (!%p523_p2), %s443_s9, 4294967040  ;;  %p13_p3 = scmp.ge.s32.totalorder %s696_s18, 4   ;;  %s861_s12 = smov %s631_s13 }
 0x10c   : > { %s862_s13 = smov %s635_s14  ;;  %s863_s14 = smov %s707_s21 }
 0x10d   : > { %s864_s15 = smov %s696_s18  ;;  %15 = sbr.rel (!%p13_p3) target bundleno = 3 (0x3), region = 67 }
 0x114   :  { %448 = vsyncpa [#allocation3], 1 }
 0x115   :  { %450 = vsyncpa [#allocation3 + $0x1], 1 }

</bundles_post_ra>
